<compile_context>
chip_gen: v7x
topology: tpu7x:2x2x1
jax: 0.10.0
libtpu: 0.0.40
codegen_flags: <defaults>
</compile_context>

<pallas_src>
import numpy as np
import jax
import jax.numpy as jnp
from jax.experimental import pallas as pl
from jax.experimental.pallas import tpu as pltpu

# ----------------------------- configuration -------------------------------
B = 2                               # batch
N = 4                               # num_vars
E = N * (N - 1)                     # 12 directed edges
NUM_DIMS = 2                        # use_3d = False
NUM_ORI = NUM_DIMS * (NUM_DIMS - 1) // 2      # 1
IN_SIZE = 2 * NUM_DIMS              # [px, py, vx, vy] = 4
REL_FEAT = 3 * NUM_DIMS + NUM_ORI   # 7  (num_relative_features)
POS_FEAT = NUM_DIMS + NUM_ORI       # 3  (num_pos_features)
EA_W = REL_FEAT + IN_SIZE           # 11 (edge_attr width)
EAP_W = EA_W + POS_FEAT             # 14 (fused [edge_attr | edge_pos] width)
H = 32                              # decoder_hidden = msg_hid = msg_out = n_hid
EDGE_TYPES = 3
SKIP_FIRST = True
N_USED = EDGE_TYPES - 1 if SKIP_FIRST else EDGE_TYPES   # 2
OUT_EF = H * N_USED                 # 64 (edge-filter output width)
BE = B * E                          # 24
BN = B * N                          # 8
EF_W = EAP_W + N_USED               # 16 (edge operand width)
NF_W = 4 * IN_SIZE                  # 16 (node operand width)
assert EF_W == NF_W                 # required for the merged activation slab

_mask = np.ones((N, N)) - np.eye(N)
SEND = np.where(_mask)[0]
RECV = np.where(_mask)[1]

# --- packed constant layout: one [64, 128] f32 buffer, static slices in-kernel ---
WP_W = 128
WP_ROWS = 64
R_WCAT, C_WCAT = 0, 0      # [16, 64]  fused edge-filter first layer (rows 14:16 zero)
R_WF2,  C_WF2  = 0, 64     # [32, 32]  edge-filter positional second layer
R_WO1,  C_WO1  = 0, 96     # [32, 32]  out_mlp layer 1
R_W2,   C_W2   = 16, 0     # [32, 64]  edge-filter output (type-major permuted)
R_WO2,  C_WO2  = 32, 64    # [32, 32]  out_mlp layer 2
R_WO3,  C_WO3  = 32, 96    # [32, 8]   [wo3 | wo3 @ pairswap]
R_SCAT, C_SCAT = 32, 104   # [8, 24]   block-diag scatter-mean matrix
R_WR,   C_WR   = 48, 0     # [8, 32]   res1 weight (rows 4:8 zero)
R_BCAT = 56                # lanes 0:64   [b1 | bf1]
R_B2   = 57                # lanes 0:64   b2 (type-major permuted)
R_BF2  = 58                # lanes 0:32   bf2
R_BR   = 58                # lanes 32:64  br
R_BO1  = 59                # lanes 0:32   bo1
R_BO2  = 59                # lanes 32:64  bo2
R_BO3  = 60                # lanes 0:8    [bo3 | bo3 @ pairswap]


# ------------------------------ Pallas kernel ------------------------------
def markov_decoder_kernel(act_ref, w_ref, out_ref):
    f32 = jnp.float32
    ef = act_ref[0:BE, :]                 # [24, 16] = [edge_attr | edge_pos | edges_used]
    nf = act_ref[BE:BE + BN, :]           # [8, 16]  = [rel_feat | inputs | rinvA | rinvB]

    # --- MLPEdgeFilter: fused first layer (block-diag [16, 64]; rows 14:16 are
    #     zero, so the trailing edges_used columns contribute nothing) ---
    hcat = jnp.dot(ef, w_ref[R_WCAT:R_WCAT + EF_W, C_WCAT:C_WCAT + 2 * H],
                   preferred_element_type=f32)
    hcat = jnp.maximum(hcat + w_ref[R_BCAT:R_BCAT + 1, 0:2 * H], 0.0)     # [24, 64]

    filt = jnp.dot(hcat[:, H:2 * H], w_ref[R_WF2:R_WF2 + H, C_WF2:C_WF2 + H],
                   preferred_element_type=f32) + w_ref[R_BF2:R_BF2 + 1, 0:H]
    h = hcat[:, 0:H] * filt                                               # position-gated

    ef_out = jnp.dot(h, w_ref[R_W2:R_W2 + H, C_W2:C_W2 + OUT_EF],
                     preferred_element_type=f32) + w_ref[R_B2:R_B2 + 1, 0:OUT_EF]
    # ef_out is type-major: column t*H + m == torch layout column m*N_USED + t

    # --- all_msgs: sum over used edge types (lane-contiguous slices) ---
    msgs = ef_out[:, 0:H] * ef[:, EAP_W:EAP_W + 1]
    for t in range(1, N_USED):
        msgs = msgs + ef_out[:, t * H:(t + 1) * H] * ef[:, EAP_W + t:EAP_W + t + 1]

    # --- scatter(..., recv_edges, dim=1, reduce='mean') as block-diag matmul ---
    agg = jnp.dot(w_ref[R_SCAT:R_SCAT + BN, C_SCAT:C_SCAT + BE], msgs,
                  preferred_element_type=f32)                             # [8, 32]

    # --- residual branch (off the critical MXU chain): the zero rows 4:8 of the
    #     padded weight kill the 'inputs' half of the aligned [8, 8] operand ---
    res = jnp.dot(nf[:, 0:2 * IN_SIZE],
                  w_ref[R_WR:R_WR + 2 * IN_SIZE, C_WR:C_WR + H],
                  preferred_element_type=f32) + w_ref[R_BR:R_BR + 1, 32:32 + H]
    aug = agg + res

    # --- out_mlp (dropout = identity at eval) ---
    h1 = jnp.maximum(jnp.dot(aug, w_ref[R_WO1:R_WO1 + H, C_WO1:C_WO1 + H],
                             preferred_element_type=f32)
                     + w_ref[R_BO1:R_BO1 + 1, 0:H], 0.0)
    h2 = jnp.maximum(jnp.dot(h1, w_ref[R_WO2:R_WO2 + H, C_WO2:C_WO2 + H],
                             preferred_element_type=f32)
                     + w_ref[R_BO2:R_BO2 + 1, 32:32 + H], 0.0)

    # --- final layer fused with the globalizer pair-swap: one matmul gives
    #     [pred | pairswap(pred)] -> no extra dependent 4x4 matmul in the tail ---
    predcat = jnp.dot(h2, w_ref[R_WO3:R_WO3 + H, C_WO3:C_WO3 + 2 * IN_SIZE],
                      preferred_element_type=f32) \
              + w_ref[R_BO3:R_BO3 + 1, 0:2 * IN_SIZE]                     # [8, 8]
    pred = predcat[:, 0:IN_SIZE]
    pred_sw = predcat[:, IN_SIZE:2 * IN_SIZE]

    x_in = nf[:, IN_SIZE:2 * IN_SIZE]
    rA = nf[:, 2 * IN_SIZE:3 * IN_SIZE]      # [r00, r11, r00, r11]
    rB = nf[:, 3 * IN_SIZE:4 * IN_SIZE]      # [r01, r10, r01, r10]
    # masked 4-lane store is negligible at this size (see perf review)
    out_ref[...] = (x_in + rA * pred + rB * pred_sw).astype(out_ref.dtype)


# ------------------------------ JAX glue ------------------------------------
def localize(inputs):
    """Localizer: velocity-aligned local coordinate frames (2D)."""
    pos = inputs[..., 0:2]
    vel = inputs[..., 2:4]
    theta = jnp.arctan2(vel[..., 1], vel[..., 0])                 # [B, N]
    c, s = jnp.cos(theta), jnp.sin(theta)
    # R rotates global -> local (by -theta); Rinv = R^T rotates back.
    R = jnp.stack([jnp.stack([c, s], -1), jnp.stack([-s, c], -1)], -2)   # [B,N,2,2]
    Rinv = jnp.swapaxes(R, -1, -2)

    vel_loc = jnp.einsum('bnij,bnj->bni', R, vel)                 # [B,N,2]
    rel_feat = jnp.concatenate([jnp.zeros_like(pos), vel_loc], -1)  # [B,N,IN_SIZE]

    R_r = R[:, RECV]                                              # receiver frames [B,E,2,2]
    d = jnp.einsum('beij,bej->bei', R_r, pos[:, SEND] - pos[:, RECV])   # [B,E,2]
    dv = jnp.einsum('beij,bej->bei', R_r, vel[:, SEND] - vel[:, RECV])  # [B,E,2]
    vs = jnp.einsum('beij,bej->bei', R_r, vel[:, SEND])                 # [B,E,2]
    dth = theta[:, SEND] - theta[:, RECV]
    dth = jnp.arctan2(jnp.sin(dth), jnp.cos(dth))[..., None]            # [B,E,1]

    rel_features = jnp.concatenate([d, dv, vs, dth], -1)                # [B,E,7]
    edge_attr = jnp.concatenate([rel_features, rel_feat[:, SEND]], -1)  # [B,E,11]
    edge_pos = jnp.concatenate([d, dth], -1)                            # [B,E,3]
    return rel_feat, Rinv, edge_attr, edge_pos


def init_params(key):
    def lin(k, fan_in, fan_out):
        kw, kb = jax.random.split(k)
        w = jax.random.normal(kw, (fan_in, fan_out), jnp.float32) * 0.1
        b = jax.random.normal(kb, (1, fan_out), jnp.float32) * 0.01
        return w, b

    ks = jax.random.split(key, 8)
    p = {}
    p['w1'], p['b1'] = lin(ks[0], EA_W, H)          # edge_filter feature MLP
    p['wf1'], p['bf1'] = lin(ks[1], POS_FEAT, H)    # edge_filter positional filter
    p['wf2'], p['bf2'] = lin(ks[2], H, H)
    p['w2'], p['b2'] = lin(ks[3], H, OUT_EF)        # edge_filter output (torch layout)
    p['wr'], p['br'] = lin(ks[4], IN_SIZE, H)       # res1
    p['wo1'], p['bo1'] = lin(ks[5], H, H)           # out_mlp
    p['wo2'], p['bo2'] = lin(ks[6], H, H)
    p['wo3'], p['bo3'] = lin(ks[7], H, IN_SIZE)
    return p


def build_scatter_matrix():
    """Block-diagonal scatter-mean matrix over receiving nodes: [B*N, B*E]."""
    counts = np.bincount(RECV, minlength=N).astype(np.float32)
    blk = np.zeros((N, E), np.float32)
    blk[RECV, np.arange(E)] = 1.0 / counts[RECV]
    return np.kron(np.eye(B, dtype=np.float32), blk)


def pack_params(p, scat):
    """Pack all weights/biases + scatter matrix into one lane-dense [64,128] buffer."""
    buf = np.zeros((WP_ROWS, WP_W), np.float32)
    # edge_filter fused first layer: block-diag [w1 | 0 ; 0 | wf1] (rows 14:16 zero)
    buf[R_WCAT:R_WCAT + EA_W, C_WCAT:C_WCAT + H] = np.asarray(p['w1'])
    buf[R_WCAT + EA_W:R_WCAT + EAP_W, C_WCAT + H:C_WCAT + 2 * H] = np.asarray(p['wf1'])
    buf[R_BCAT, 0:H] = np.asarray(p['b1'])[0]
    buf[R_BCAT, H:2 * H] = np.asarray(p['bf1'])[0]
    buf[R_WF2:R_WF2 + H, C_WF2:C_WF2 + H] = np.asarray(p['wf2'])
    buf[R_BF2, 0:H] = np.asarray(p['bf2'])[0]
    # torch .view(msg_out, n_used): col = m*N_USED + t  ->  type-major col = t*H + m
    perm = np.array([m * N_USED + t for t in range(N_USED) for m in range(H)])
    buf[R_W2:R_W2 + H, C_W2:C_W2 + OUT_EF] = np.asarray(p['w2'])[:, perm]
    buf[R_B2, 0:OUT_EF] = np.asarray(p['b2'])[0, perm]
    # res1 (rows IN_SIZE:8 stay zero so the 'inputs' half of the operand is killed)
    buf[R_WR:R_WR + IN_SIZE, C_WR:C_WR + H] = np.asarray(p['wr'])
    buf[R_BR, 32:32 + H] = np.asarray(p['br'])[0]
    # out_mlp
    buf[R_WO1:R_WO1 + H, C_WO1:C_WO1 + H] = np.asarray(p['wo1'])
    buf[R_BO1, 0:H] = np.asarray(p['bo1'])[0]
    buf[R_WO2:R_WO2 + H, C_WO2:C_WO2 + H] = np.asarray(p['wo2'])
    buf[R_BO2, 32:32 + H] = np.asarray(p['bo2'])[0]
    # final layer fused with globalizer pair-swap: [wo3 | wo3 @ psw], [bo3 | bo3 @ psw]
    psw = np.zeros((IN_SIZE, IN_SIZE), np.float32)
    psw[1, 0] = psw[0, 1] = psw[3, 2] = psw[2, 3] = 1.0
    wo3 = np.asarray(p['wo3']); bo3 = np.asarray(p['bo3'])[0]
    buf[R_WO3:R_WO3 + H, C_WO3:C_WO3 + IN_SIZE] = wo3
    buf[R_WO3:R_WO3 + H, C_WO3 + IN_SIZE:C_WO3 + 2 * IN_SIZE] = wo3 @ psw
    buf[R_BO3, 0:IN_SIZE] = bo3
    buf[R_BO3, IN_SIZE:2 * IN_SIZE] = bo3 @ psw
    # scatter-mean matrix
    buf[R_SCAT:R_SCAT + BN, C_SCAT:C_SCAT + BE] = scat
    return jnp.asarray(buf)


def markov_decoder_forward(inputs, hidden, edges, wpack):
    """inputs: [B, N, IN_SIZE], edges: [B, E, EDGE_TYPES] -> (inputs + pred, None)."""
    del hidden  # MarkovDecoder carries no hidden state
    rel_feat, Rinv, edge_attr, edge_pos = localize(inputs)

    start = 1 if SKIP_FIRST else 0
    edges_used = edges[..., start:]                                       # [B, E, N_USED]
    edge_feat = jnp.concatenate([edge_attr, edge_pos, edges_used],
                                axis=-1).reshape(BE, EF_W)                # [B*E, 16]

    r00 = Rinv[..., 0, 0]; r01 = Rinv[..., 0, 1]
    r10 = Rinv[..., 1, 0]; r11 = Rinv[..., 1, 1]
    rA = jnp.stack([r00, r11, r00, r11], -1)                              # [B, N, 4]
    rB = jnp.stack([r01, r10, r01, r10], -1)                              # [B, N, 4]
    node_feat = jnp.concatenate([rel_feat, inputs, rA, rB],
                                axis=-1).reshape(BN, NF_W)                # [B*N, 16]

    # single activation slab: edge rows 0:24, node rows 24:32 (both 8-row aligned)
    act = jnp.concatenate([edge_feat, node_feat], axis=0)                 # [32, 16]

    out = pl.pallas_call(
        markov_decoder_kernel,
        out_shape=jax.ShapeDtypeStruct((BN, IN_SIZE), jnp.float32),
        compiler_params=pltpu.CompilerParams(vmem_limit_bytes=8 * 1024 * 1024),
    )(act, wpack)
    return out.reshape(B, N, IN_SIZE), None


# ----------------------- pure-JAX reference (for checking) -------------------
def reference_forward(inputs, edges, p):
    rel_feat, Rinv, edge_attr, edge_pos = localize(inputs)
    h = jax.nn.relu(edge_attr @ p['w1'] + p['b1'])
    filt = jax.nn.relu(edge_pos @ p['wf1'] + p['bf1']) @ p['wf2'] + p['bf2']
    ef_out = (h * filt) @ p['w2'] + p['b2']                               # [B, E, 64]
    start = 1 if SKIP_FIRST else 0
    eu = edges[..., start:]                                               # [B, E, N_USED]
    all_msgs = (ef_out.reshape(B, E, H, N_USED) * eu[..., None, :]).sum(-1)
    counts = jnp.asarray(np.bincount(RECV, minlength=N).astype(np.float32))
    agg = jnp.zeros((B, N, H)).at[:, jnp.asarray(RECV)].add(all_msgs) / counts[None, :, None]
    res = rel_feat @ p['wr'] + p['br']
    aug = agg + res
    pred = jax.nn.relu(aug @ p['wo1'] + p['bo1'])
    pred = jax.nn.relu(pred @ p['wo2'] + p['bo2'])
    pred = pred @ p['wo3'] + p['bo3']
    r00 = Rinv[..., 0, 0:1]; r01 = Rinv[..., 0, 1:2]
    r10 = Rinv[..., 1, 0:1]; r11 = Rinv[..., 1, 1:2]
    gp0 = r00 * pred[..., 0:1] + r01 * pred[..., 1:2]
    gp1 = r10 * pred[..., 0:1] + r11 * pred[..., 1:2]
    gv0 = r00 * pred[..., 2:3] + r01 * pred[..., 3:4]
    gv1 = r10 * pred[..., 2:3] + r11 * pred[..., 3:4]
    return inputs + jnp.concatenate([gp0, gp1, gv0, gv1], -1)


# --------------------------------- main --------------------------------------
if __name__ == "__main__":
    key = jax.random.PRNGKey(0)
    k_in, k_e, k_p = jax.random.split(key, 3)

    inputs = jax.random.normal(k_in, (B, N, IN_SIZE), jnp.float32)     # [px, py, vx, vy]
    edge_logits = jax.random.normal(k_e, (B, E, EDGE_TYPES), jnp.float32)
    edges = jax.nn.softmax(edge_logits, axis=-1)                       # edge-type probabilities
    params = init_params(k_p)

    scat = build_scatter_matrix()          # built once
    wpack = pack_params(params, scat)      # built once, outside the per-call path

    fwd = jax.jit(markov_decoder_forward)
    out, hidden = fwd(inputs, None, edges, wpack)
    out = jax.block_until_ready(out)

    assert out.shape == (B, N, IN_SIZE) and hidden is None
    assert bool(jnp.all(jnp.isfinite(out)))

    ref = reference_forward(inputs, edges, params)
    assert bool(jnp.allclose(out, ref, atol=1e-4, rtol=1e-4)), "kernel != reference"

    print("KERNEL_OK")
</pallas_src>

<mosaic_0001>
module attributes {stable_mosaic.version = 11 : i64} {
  func.func @markov_decoder_kernel(%arg0: memref<32x16xf32, #tpu.memory_space<vmem>>, %arg1: memref<64x128xf32, #tpu.memory_space<vmem>>, %arg2: memref<8x4xf32, #tpu.memory_space<vmem>>) attributes {dimension_semantics = [], scalar_prefetch = 0 : i64, scratch_operands = 0 : i64, tpu.core_type = #tpu.core_type<tc>} {
    %c0 = arith.constant 0 : index
    %c0_0 = arith.constant 0 : index
    %0 = vector.load %arg0[%c0, %c0_0] : memref<32x16xf32, #tpu.memory_space<vmem>>, vector<24x16xf32>
    %c24 = arith.constant 24 : index
    %c0_1 = arith.constant 0 : index
    %1 = vector.load %arg0[%c24, %c0_1] : memref<32x16xf32, #tpu.memory_space<vmem>>, vector<8x16xf32>
    %c0_2 = arith.constant 0 : index
    %c0_3 = arith.constant 0 : index
    %2 = vector.load %arg1[%c0_2, %c0_3] : memref<64x128xf32, #tpu.memory_space<vmem>>, vector<16x64xf32>
    %cst = arith.constant dense<0.000000e+00> : vector<24x64xf32>
    %3 = tpu.matmul %0, %2, %cst {dimension_numbers = #tpu.dot_dimension_numbers<[1], [0], [0], [1], [0, 0, 1, 1], [], []>} : vector<24x16xf32>, vector<16x64xf32>, vector<24x64xf32> -> vector<24x64xf32>
    %c56 = arith.constant 56 : index
    %c0_4 = arith.constant 0 : index
    %4 = vector.load %arg1[%c56, %c0_4] : memref<64x128xf32, #tpu.memory_space<vmem>>, vector<1x64xf32>
    %5 = vector.broadcast %4 : vector<1x64xf32> to vector<24x64xf32>
    %6 = arith.addf %3, %5 : vector<24x64xf32>
    %cst_5 = arith.constant 0.000000e+00 : f32
    %7 = vector.broadcast %cst_5 : f32 to vector<24x64xf32>
    %8 = arith.maximumf %6, %7 : vector<24x64xf32>
    %9 = vector.extract_strided_slice %8 {offsets = [0, 32], sizes = [24, 32], strides = [1, 1]} : vector<24x64xf32> to vector<24x32xf32>
    %c0_6 = arith.constant 0 : index
    %c64 = arith.constant 64 : index
    %10 = vector.load %arg1[%c0_6, %c64] : memref<64x128xf32, #tpu.memory_space<vmem>>, vector<32x32xf32>
    %cst_7 = arith.constant dense<0.000000e+00> : vector<24x32xf32>
    %11 = tpu.matmul %9, %10, %cst_7 {dimension_numbers = #tpu.dot_dimension_numbers<[1], [0], [0], [1], [0, 0, 1, 1], [], []>} : vector<24x32xf32>, vector<32x32xf32>, vector<24x32xf32> -> vector<24x32xf32>
    %c58 = arith.constant 58 : index
    %c0_8 = arith.constant 0 : index
    %12 = vector.load %arg1[%c58, %c0_8] : memref<64x128xf32, #tpu.memory_space<vmem>>, vector<1x32xf32>
    %13 = vector.broadcast %12 : vector<1x32xf32> to vector<24x32xf32>
    %14 = arith.addf %11, %13 : vector<24x32xf32>
    %15 = vector.extract_strided_slice %8 {offsets = [0, 0], sizes = [24, 32], strides = [1, 1]} : vector<24x64xf32> to vector<24x32xf32>
    %16 = arith.mulf %15, %14 : vector<24x32xf32>
    %c16 = arith.constant 16 : index
    %c0_9 = arith.constant 0 : index
    %17 = vector.load %arg1[%c16, %c0_9] : memref<64x128xf32, #tpu.memory_space<vmem>>, vector<32x64xf32>
    %cst_10 = arith.constant dense<0.000000e+00> : vector<24x64xf32>
    %18 = tpu.matmul %16, %17, %cst_10 {dimension_numbers = #tpu.dot_dimension_numbers<[1], [0], [0], [1], [0, 0, 1, 1], [], []>} : vector<24x32xf32>, vector<32x64xf32>, vector<24x64xf32> -> vector<24x64xf32>
    %c57 = arith.constant 57 : index
    %c0_11 = arith.constant 0 : index
    %19 = vector.load %arg1[%c57, %c0_11] : memref<64x128xf32, #tpu.memory_space<vmem>>, vector<1x64xf32>
    %20 = vector.broadcast %19 : vector<1x64xf32> to vector<24x64xf32>
    %21 = arith.addf %18, %20 : vector<24x64xf32>
    %22 = vector.extract_strided_slice %21 {offsets = [0, 0], sizes = [24, 32], strides = [1, 1]} : vector<24x64xf32> to vector<24x32xf32>
    %23 = vector.extract_strided_slice %0 {offsets = [0, 14], sizes = [24, 1], strides = [1, 1]} : vector<24x16xf32> to vector<24x1xf32>
    %24 = vector.broadcast %23 : vector<24x1xf32> to vector<24x32xf32>
    %25 = arith.mulf %22, %24 : vector<24x32xf32>
    %26 = vector.extract_strided_slice %21 {offsets = [0, 32], sizes = [24, 32], strides = [1, 1]} : vector<24x64xf32> to vector<24x32xf32>
    %27 = vector.extract_strided_slice %0 {offsets = [0, 15], sizes = [24, 1], strides = [1, 1]} : vector<24x16xf32> to vector<24x1xf32>
    %28 = vector.broadcast %27 : vector<24x1xf32> to vector<24x32xf32>
    %29 = arith.mulf %26, %28 : vector<24x32xf32>
    %30 = arith.addf %25, %29 : vector<24x32xf32>
    %c32 = arith.constant 32 : index
    %c104 = arith.constant 104 : index
    %31 = vector.load %arg1[%c32, %c104] : memref<64x128xf32, #tpu.memory_space<vmem>>, vector<8x24xf32>
    %cst_12 = arith.constant dense<0.000000e+00> : vector<8x32xf32>
    %32 = tpu.matmul %31, %30, %cst_12 {dimension_numbers = #tpu.dot_dimension_numbers<[1], [0], [0], [1], [0, 0, 1, 1], [], []>} : vector<8x24xf32>, vector<24x32xf32>, vector<8x32xf32> -> vector<8x32xf32>
    %33 = vector.extract_strided_slice %1 {offsets = [0, 0], sizes = [8, 8], strides = [1, 1]} : vector<8x16xf32> to vector<8x8xf32>
    %c48 = arith.constant 48 : index
    %c0_13 = arith.constant 0 : index
    %34 = vector.load %arg1[%c48, %c0_13] : memref<64x128xf32, #tpu.memory_space<vmem>>, vector<8x32xf32>
    %cst_14 = arith.constant dense<0.000000e+00> : vector<8x32xf32>
    %35 = tpu.matmul %33, %34, %cst_14 {dimension_numbers = #tpu.dot_dimension_numbers<[1], [0], [0], [1], [0, 0, 1, 1], [], []>} : vector<8x8xf32>, vector<8x32xf32>, vector<8x32xf32> -> vector<8x32xf32>
    %c58_15 = arith.constant 58 : index
    %c32_16 = arith.constant 32 : index
    %36 = vector.load %arg1[%c58_15, %c32_16] : memref<64x128xf32, #tpu.memory_space<vmem>>, vector<1x32xf32>
    %37 = vector.broadcast %36 : vector<1x32xf32> to vector<8x32xf32>
    %38 = arith.addf %35, %37 : vector<8x32xf32>
    %39 = arith.addf %32, %38 : vector<8x32xf32>
    %c0_17 = arith.constant 0 : index
    %c96 = arith.constant 96 : index
    %40 = vector.load %arg1[%c0_17, %c96] : memref<64x128xf32, #tpu.memory_space<vmem>>, vector<32x32xf32>
    %cst_18 = arith.constant dense<0.000000e+00> : vector<8x32xf32>
    %41 = tpu.matmul %39, %40, %cst_18 {dimension_numbers = #tpu.dot_dimension_numbers<[1], [0], [0], [1], [0, 0, 1, 1], [], []>} : vector<8x32xf32>, vector<32x32xf32>, vector<8x32xf32> -> vector<8x32xf32>
    %c59 = arith.constant 59 : index
    %c0_19 = arith.constant 0 : index
    %42 = vector.load %arg1[%c59, %c0_19] : memref<64x128xf32, #tpu.memory_space<vmem>>, vector<1x32xf32>
    %43 = vector.broadcast %42 : vector<1x32xf32> to vector<8x32xf32>
    %44 = arith.addf %41, %43 : vector<8x32xf32>
    %cst_20 = arith.constant 0.000000e+00 : f32
    %45 = vector.broadcast %cst_20 : f32 to vector<8x32xf32>
    %46 = arith.maximumf %44, %45 : vector<8x32xf32>
    %c32_21 = arith.constant 32 : index
    %c64_22 = arith.constant 64 : index
    %47 = vector.load %arg1[%c32_21, %c64_22] : memref<64x128xf32, #tpu.memory_space<vmem>>, vector<32x32xf32>
    %cst_23 = arith.constant dense<0.000000e+00> : vector<8x32xf32>
    %48 = tpu.matmul %46, %47, %cst_23 {dimension_numbers = #tpu.dot_dimension_numbers<[1], [0], [0], [1], [0, 0, 1, 1], [], []>} : vector<8x32xf32>, vector<32x32xf32>, vector<8x32xf32> -> vector<8x32xf32>
    %c59_24 = arith.constant 59 : index
    %c32_25 = arith.constant 32 : index
    %49 = vector.load %arg1[%c59_24, %c32_25] : memref<64x128xf32, #tpu.memory_space<vmem>>, vector<1x32xf32>
    %50 = vector.broadcast %49 : vector<1x32xf32> to vector<8x32xf32>
    %51 = arith.addf %48, %50 : vector<8x32xf32>
    %cst_26 = arith.constant 0.000000e+00 : f32
    %52 = vector.broadcast %cst_26 : f32 to vector<8x32xf32>
    %53 = arith.maximumf %51, %52 : vector<8x32xf32>
    %c32_27 = arith.constant 32 : index
    %c96_28 = arith.constant 96 : index
    %54 = vector.load %arg1[%c32_27, %c96_28] : memref<64x128xf32, #tpu.memory_space<vmem>>, vector<32x8xf32>
    %cst_29 = arith.constant dense<0.000000e+00> : vector<8x8xf32>
    %55 = tpu.matmul %53, %54, %cst_29 {dimension_numbers = #tpu.dot_dimension_numbers<[1], [0], [0], [1], [0, 0, 1, 1], [], []>} : vector<8x32xf32>, vector<32x8xf32>, vector<8x8xf32> -> vector<8x8xf32>
    %c60 = arith.constant 60 : index
    %c0_30 = arith.constant 0 : index
    %56 = vector.load %arg1[%c60, %c0_30] : memref<64x128xf32, #tpu.memory_space<vmem>>, vector<1x8xf32>
    %57 = vector.broadcast %56 : vector<1x8xf32> to vector<8x8xf32>
    %58 = arith.addf %55, %57 : vector<8x8xf32>
    %59 = vector.extract_strided_slice %58 {offsets = [0, 0], sizes = [8, 4], strides = [1, 1]} : vector<8x8xf32> to vector<8x4xf32>
    %60 = vector.extract_strided_slice %58 {offsets = [0, 4], sizes = [8, 4], strides = [1, 1]} : vector<8x8xf32> to vector<8x4xf32>
    %61 = vector.extract_strided_slice %1 {offsets = [0, 4], sizes = [8, 4], strides = [1, 1]} : vector<8x16xf32> to vector<8x4xf32>
    %62 = vector.extract_strided_slice %1 {offsets = [0, 8], sizes = [8, 4], strides = [1, 1]} : vector<8x16xf32> to vector<8x4xf32>
    %63 = vector.extract_strided_slice %1 {offsets = [0, 12], sizes = [8, 4], strides = [1, 1]} : vector<8x16xf32> to vector<8x4xf32>
    %64 = arith.mulf %62, %59 : vector<8x4xf32>
    %65 = arith.addf %61, %64 : vector<8x4xf32>
    %66 = arith.mulf %63, %60 : vector<8x4xf32>
    %67 = arith.addf %65, %66 : vector<8x4xf32>
    %c0_31 = arith.constant 0 : index
    %c0_32 = arith.constant 0 : index
    %68 = vector.load %arg2[%c0_31, %c0_32] : memref<8x4xf32, #tpu.memory_space<vmem>>, vector<8x4xf32>
    tpu.vector_store %arg2[%c0_31, %c0_32], %67 {strides = array<i32>} : memref<8x4xf32, #tpu.memory_space<vmem>>, vector<8x4xf32>,
    return
  }
}

</mosaic_0001>

<bundles_post_ra>
// kernel: neg.0
= control target key start
LH: loop header
LB: loop body
LE: loop exit
PB: predicated region body
PF: predicated region fallthrough
CT: control target
= control target key end

     0   :  { %s40_s0 = inlined_call_operand.vmem [shape: f32[2,4,1], index: 0, kind: input, shape index: {}]   ;;  %s41_s1 = inlined_call_operand.vmem [shape: f32[2,4,1], index: 1, kind: output, shape index: {}]  }
   0x1   :  { %v2_v0 = vld [vmem:[%s40_s0] sm:$0xf]  ;;  %v16_v1 = vld [vmem:[%s40_s0 + $0x4] sm:$0xf] }
   0x2   :  { %v5_v2 = vxor.u32 2147483648, %v2_v0  ;;  %v12_v3 = vxor.u32 2147483648, %v16_v1 }
   0x4   :  { %7 = vst [vmem:[%s41_s1] sm:$0xf] %v5_v2  ;;  %17 = vst [vmem:[%s41_s1 + $0x4] sm:$0xf] %v12_v3 }

// kernel: cos.0
= control target key start
LH: loop header
LB: loop body
LE: loop exit
PB: predicated region body
PF: predicated region fallthrough
CT: control target
= control target key end

     0   :  { %v246_v21 = vmov 683565275   ;;  %v247_v23 = vmov 2475754826   ;;  %v248_v25 = vmov 2131351028   ;;  %s358_s0 = inlined_call_operand.vmem [shape: f32[2,4,1], index: 0, kind: input, shape index: {}]   ;;  %s359_s1 = inlined_call_operand.vmem [shape: f32[2,4,1], index: 1, kind: output, shape index: {}]  }
   0x1   :  { %v265_v0 = vld [vmem:[%s358_s0] sm:$0xf]  ;;  %v272_v3 = vld [vmem:[%s358_s0 + $0x4] sm:$0xf]  ;;  %v249_v27 = vmov 2102212464  }
   0x2   :  { %v3_v1 = vand.u32 2147483647, %v265_v0  ;;  %v6_v2 = vand.u32 2139095040, %v265_v0  ;;  %v109_v6 = vand.u32 2147483647, %v272_v3  ;;  %v112_v7 = vand.u32 2139095040, %v272_v3 }
   0x3   :  { %v250_v29 = vmov 920167782   ;;  %v251_v36 = vmov 1326507024   ;;  %vm5_vm14 = vcmp.lt.s32.totalorder %v265_v0, 0 }
   0x4   :  { %v7_v4 = vshrl.u32 %v6_v2, 23  ;;  %v10_v5 = vand.u32 8388607, %v3_v1  ;;  %v113_v9 = vshrl.u32 %v112_v7, 23  ;;  %v280_v13 = vand.u32 8388607, %v109_v6 }
   0x5   :  { %vm329_vm15 = vcmp.le.f32.partialorder %v3_v1, 0.7853982 }
   0x6   :  { %v214_v8 = vadd.s32 4294967169, %v7_v4  ;;  %v11_v11 = vor.u32 8388608, %v10_v5  ;;  %v219_v12 = vadd.s32 4294967169, %v113_v9  ;;  %v117_v19 = vor.u32 8388608, %v280_v13 }
   0x8   :  { %v13_v10 = vadd.s32 1, %v214_v8  ;;  %v119_v15 = vadd.s32 1, %v219_v12  ;;  %v282_v18 = vshll.u32 %v11_v11, 8  ;;  %v157_v13 = vshll.u32 %v117_v19, 8 }
   0xa   :  { %vm14_vm0 = vcmp.gt.s32.totalorder %v13_v10, 0  ;;  %vm120_vm1 = vcmp.gt.s32.totalorder %v119_v15, 0 }
   0xb   :  { %v15_v14 = vsel %vm14_vm0, %v13_v10, 0  ;;  %v121_v41 = vsel %vm120_vm1, %v119_v15, 0  ;;  %vm111_vm0 = vcmp.lt.s32.totalorder %v272_v3, 0  ;;  %vm341_vm1 = vcmp.le.f32.partialorder %v109_v6, 0.7853982 }
   0xc   :  { %v16_v16 = vshrl.u32 %v15_v14, 5  ;;  %v17_v17 = vand.u32 31, %v15_v14  ;;  %v122_v44 = vshrl.u32 %v121_v41, 5  ;;  %v123_v45 = vand.u32 31, %v121_v41 }
   0xe   :  { %v18_v20 = vsub.s32 32, %v17_v17  ;;  %v20_v22 = vshll.u32 %v246_v21, %v17_v17  ;;  %v23_v24 = vshll.u32 %v247_v23, %v17_v17  ;;  %v26_v26 = vshll.u32 %v248_v25, %v17_v17 }
   0xf   :  { %v29_v28 = vshll.u32 %v249_v27, %v17_v17  ;;  %v32_v30 = vshll.u32 %v250_v29, %v17_v17  ;;  %vm35_vm2 = vcmp.lt.s32.totalorder %v16_v16, 1  ;;  %vm36_vm3 = vcmp.lt.s32.totalorder %v16_v16, 2 }
  0x10   :  { %v19_v31 = vshrl.u32 %v246_v21, %v18_v20  ;;  %v21_v32 = vshrl.u32 %v247_v23, %v18_v20  ;;  %v24_v33 = vshrl.u32 %v248_v25, %v18_v20  ;;  %v27_v34 = vshrl.u32 %v249_v27, %v18_v20 }
  0x11   :  { %v30_v35 = vshrl.u32 %v250_v29, %v18_v20  ;;  %v33_v37 = vshrl.u32 %v251_v36, %v18_v20  ;;  %vm37_vm4 = vcmp.lt.s32.totalorder %v16_v16, 3  ;;  %vm38_vm5 = vcmp.lt.s32.totalorder %v16_v16, 4 }
  0x12   :  { %v22_v38 = vor.u32 %v21_v32, %v20_v22  ;;  %v25_v39 = vor.u32 %v24_v33, %v23_v24  ;;  %v28_v40 = vor.u32 %v27_v34, %v26_v26  ;;  %v124_v53 = vsub.s32 32, %v123_v45 }
  0x13   :  { %v31_v42 = vor.u32 %v30_v35, %v29_v28  ;;  %v34_v43 = vor.u32 %v33_v37, %v32_v30  ;;  %v126_v57 = vshll.u32 %v246_v21, %v123_v45  ;;  %v129_v7 = vshll.u32 %v247_v23, %v123_v45 }
  0x14   :  { %v39_v46 = vsel %vm35_vm2, %v19_v31, %v22_v38  ;;  %v40_v47 = vsel %vm38_vm5, %v28_v40, 2102212464  ;;  %v43_v48 = vsel %vm35_vm2, %v22_v38, %v25_v39  ;;  %v47_v49 = vsel %vm35_vm2, %v25_v39, %v28_v40 }
  0x15   :  { %v41_v50 = vsel %vm37_vm4, %v25_v39, %v40_v47  ;;  %v44_v51 = vsel %vm38_vm5, %v31_v42, 920167782  ;;  %v48_v52 = vsel %vm38_vm5, %v34_v43, 1326507024  ;;  %v125_v61 = vshrl.u32 %v246_v21, %v124_v53 }
  0x16   :  { %v42_v54 = vsel %vm36_vm3, %v39_v46, %v41_v50  ;;  %v45_v55 = vsel %vm37_vm4, %v28_v40, %v44_v51  ;;  %v49_v56 = vsel %vm37_vm4, %v31_v42, %v48_v52  ;;  %v127_v5 = vshrl.u32 %v247_v23, %v124_v53 }
  0x17   :  { %v46_v58 = vsel %vm36_vm3, %v43_v48, %v45_v55  ;;  %v50_v59 = vsel %vm36_vm3, %v47_v49, %v49_v56  ;;  %v58_v60 = vmul.u32 %v282_v18, %v42_v54  ;;  %v130_v8 = vshrl.u32 %v248_v25, %v124_v53 }
  0x18   :  { %v297_v62 = vmul.u32.u64.low %v282_v18, %v50_v59  ;;  %v298_v63 = vmul.u32.u64.high %v282_v18, %v50_v59, %v297_v62  ;;  %v301_v2 = vmul.u32.u64.low %v282_v18, %v46_v58  ;;  %v302_v4 = vmul.u32.u64.high %v282_v18, %v46_v58, %v301_v2 }
  0x19   :  { %v132_v9 = vshll.u32 %v248_v25, %v123_v45  ;;  %v133_v10 = vshrl.u32 %v249_v27, %v124_v53  ;;  %v135_v11 = vshll.u32 %v249_v27, %v123_v45  ;;  %v136_v12 = vshrl.u32 %v250_v29, %v124_v53 }
  0x1a   :  { %v138_v14 = vshll.u32 %v250_v29, %v123_v45  ;;  %v128_v15 = vor.u32 %v127_v5, %v126_v57  ;;  %v131_v16 = vor.u32 %v130_v8, %v129_v7  ;;  %v139_v17 = vshrl.u32 %v251_v36, %v124_v53 }
  0x1b   :  { %vm141_vm6 = vcmp.lt.s32.totalorder %v122_v44, 1  ;;  %vm60_vm7 = vc.u32 %v298_v63, %v301_v2  ;;  %v61_v18 = vadd.s32 1, %v302_v4  ;;  %v134_v20 = vor.u32 %v133_v10, %v132_v9 }
  0x1c   :  { %v137_v19 = vor.u32 %v136_v12, %v135_v11  ;;  %v140_v21 = vor.u32 %v139_v17, %v138_v14  ;;  %vm142_vm8 = vcmp.lt.s32.totalorder %v122_v44, 2  ;;  %vm143_vm9 = vcmp.lt.s32.totalorder %v122_v44, 3 }
  0x1d   :  { %v62_v22 = vsel %vm60_vm7, %v61_v18, %v302_v4  ;;  %vm144_vm10 = vcmp.lt.s32.totalorder %v122_v44, 4  ;;  %v145_v23 = vsel %vm141_vm6, %v125_v61, %v128_v15  ;;  %v149_v24 = vsel %vm141_vm6, %v128_v15, %v131_v16 }
  0x1e   :  { %v63_v25 = vadd.s32 %v62_v22, %v58_v60  ;;  %v146_v26 = vsel %vm144_vm10, %v134_v20, 2102212464  ;;  %v150_v27 = vsel %vm144_vm10, %v137_v19, 920167782  ;;  %v153_v28 = vsel %vm141_vm6, %v131_v16, %v134_v20 }
  0x1f   :  { %v147_v29 = vsel %vm143_vm9, %v131_v16, %v146_v26  ;;  %v151_v30 = vsel %vm143_vm9, %v134_v20, %v150_v27  ;;  %v154_v31 = vsel %vm144_vm10, %v140_v21, 1326507024  ;;  %v59_v55 = vadd.s32 %v301_v2, %v298_v63 }
  0x20   :  { %v64_v32 = vadd.s32 536870912, %v63_v25  ;;  %v152_v33 = vsel %vm142_vm8, %v149_v24, %v151_v30  ;;  %v155_v34 = vsel %vm143_vm9, %v137_v19, %v154_v31  ;;  %v148_v35 = vsel %vm142_vm8, %v145_v23, %v147_v29 }
  0x21   :  { %v156_v36 = vsel %vm142_vm8, %v153_v28, %v155_v34  ;;  %v315_v37 = vmul.u32.u64.low %v157_v13, %v152_v33  ;;  %v316_v38 = vmul.u32.u64.high %v157_v13, %v152_v33, %v315_v37  ;;  %v164_v43 = vmul.u32 %v157_v13, %v148_v35 }
  0x22   :  { %v65_v39 = vshrl.u32 %v64_v32, 30  ;;  %v318_v40 = vmul.u32.u64.low %v157_v13, %v156_v36  ;;  %v319_v41 = vmul.u32.u64.high %v157_v13, %v156_v36, %v318_v40  ;;  %vm95_vm5 = vweird.f32 %v265_v0 }
  0x23   :  { %v167_v44 = vadd.s32 1, %v316_v38  ;;  %vm201_vm9 = vweird.f32 %v272_v3 }
  0x24   :  { %v66_v42 = vshll.u32 %v65_v39, 30  ;;  %vm166_vm11 = vc.u32 %v319_v41, %v315_v37  ;;  %v165_v12 = vadd.s32 %v315_v37, %v319_v41  ;;  %v89_v13 = vsub.s32 4, %v65_v39 }
  0x25   :  { %v168_v46 = vsel %vm166_vm11, %v167_v44, %v316_v38 }
  0x26   :  { %v67_v45 = vsub.s32 %v63_v25, %v66_v42  ;;  %v169_v48 = vadd.s32 %v168_v46, %v164_v43  ;;  %v90_v26 = vsel %vm5_vm14, %v89_v13, %v65_v39 }
  0x27   :  { %v92_v29 = vsel %vm329_vm15, 0, %v90_v26 }
  0x28   :  { %v69_v47 = vsub.s32 0, %v67_v45  ;;  %v170_v50 = vadd.s32 536870912, %v169_v48  ;;  %v96_v32 = vand.u32 3, %v92_v29 }
  0x2a   :  { %v215_v49 = vmin.u32 %v69_v47, %v67_v45  ;;  %v171_v52 = vshrl.u32 %v170_v50, 30  ;;  %vm101_vm2 = vcmp.eq.s32.totalorder %v96_v32, 2  ;;  %vm98_vm3 = vcmp.eq.s32.totalorder %v96_v32, 0 }
  0x2b   :  { %vm97_vm4 = vcmp.lt.s32.totalorder %v96_v32, 2 }
  0x2c   :  { %v71_v51 = vclz %v215_v49  ;;  %v172_v54 = vshll.u32 %v171_v52, 30  ;;  %v195_v34 = vsub.s32 4, %v171_v52 }
  0x2e   :  { %v216_v53 = vadd.s32 4294967294, %v71_v51  ;;  %v173_v57 = vsub.s32 %v169_v48, %v172_v54  ;;  %v196_v40 = vsel %vm111_vm0, %v195_v34, %v171_v52 }
  0x2f   :  { %v198_v43 = vsel %vm341_vm1, 0, %v196_v40 }
  0x30   :  { %vm217_vm12 = vcmp.lt.s32.totalorder %v216_v53, 0  ;;  %v175_v61 = vsub.s32 0, %v173_v57  ;;  %v202_v46 = vand.u32 3, %v198_v43 }
  0x31   :  { %v74_v56 = vsel %vm217_vm12, 0, %v216_v53 }
  0x32   :  { %v75_v58 = vsub.s32 32, %v74_v56  ;;  %v76_v59 = vshll.u32 %v67_v45, %v74_v56  ;;  %v79_v60 = vsub.s32 4294967266, %v74_v56  ;;  %v220_v2 = vmin.u32 %v175_v61, %v173_v57 }
  0x33   :  { %vm207_vm6 = vcmp.eq.s32.totalorder %v202_v46, 2  ;;  %vm204_vm7 = vcmp.eq.s32.totalorder %v202_v46, 0  ;;  %vm203_vm8 = vcmp.lt.s32.totalorder %v202_v46, 2 }
  0x34   :  { %v77_v62 = vshrl.u32 %v59_v55, %v75_v58  ;;  %v80_v63 = vadd.s32 127, %v79_v60  ;;  %v177_v7 = vclz %v220_v2 }
  0x36   :  { %v78_v4 = vor.u32 %v77_v62, %v76_v59  ;;  %v81_v5 = vshll.u32 %v80_v63, 23  ;;  %v221_v10 = vadd.s32 4294967294, %v177_v7 }
  0x38   :  { %v82_v8 = vor.u32 4788187, %v81_v5  ;;  %v85_v9 = vcvt.s32.f32 %v78_v4  ;;  %vm222_vm13 = vcmp.lt.s32.totalorder %v221_v10, 0 }
  0x39   :  { %v180_v15 = vsel %vm222_vm13, 0, %v221_v10 }
  0x3a   :  { %v83_v11 = vand.u32 2147483647, %v82_v8  ;;  %v181_v16 = vsub.s32 32, %v180_v15  ;;  %v182_v17 = vshll.u32 %v173_v57, %v180_v15  ;;  %v185_v18 = vsub.s32 4294967266, %v180_v15 }
  0x3c   :  { %v86_v14 = vmul.f32 %v85_v9, %v83_v11  ;;  %v183_v19 = vshrl.u32 %v165_v12, %v181_v16  ;;  %v186_v21 = vadd.s32 127, %v185_v18 }
  0x3e   :  { %v87_v20 = vxor.u32 2147483648, %v86_v14  ;;  %v184_v24 = vor.u32 %v183_v19, %v182_v17  ;;  %v187_v25 = vshll.u32 %v186_v21, 23 }
  0x40   :  { %v88_v22 = vsel %vm5_vm14, %v87_v20, %v86_v14  ;;  %v188_v27 = vor.u32 4788187, %v187_v25  ;;  %v191_v28 = vcvt.s32.f32 %v184_v24 }
  0x41   :  { %v91_v23 = vsel %vm329_vm15, %v265_v0, %v88_v22 }
  0x42   :  { %238 = vcosq.f32 %v91_v23  ;;  %v189_v30 = vand.u32 2147483647, %v188_v27 }
  0x43   :  { %240 = vsinq.f32 %v91_v23 }
  0x44   :  { %v192_v31 = vmul.f32 %v191_v28, %v189_v30 }
  0x46   :  { %v193_v33 = vxor.u32 2147483648, %v192_v31 }
  0x48   :  { %v194_v35 = vsel %vm111_vm0, %v193_v33, %v192_v31 }
  0x49   :  { %v197_v37 = vsel %vm341_vm1, %v272_v3, %v194_v35 }
  0x4a   :  { %242 = vcosq.f32 %v197_v37 }
  0x4b   :  { %244 = vsinq.f32 %v197_v37 }
  0x4c   :  { %v239_v36 = vpop.eup %238 }
  0x4d   :  { %v241_v38 = vpop.eup %240  ;;  %v102_v39 = vxor.u32 2147483648, %v239_v36 }
  0x4e   :  { %v99_v41 = vxor.u32 2147483648, %v241_v38 }
  0x4f   :  { %v103_v0 = vsel %vm101_vm2, %v102_v39, %v241_v38 }
  0x50   :  { %v100_v42 = vsel %vm98_vm3, %v239_v36, %v99_v41 }
  0x51   :  { %v104_v44 = vsel %vm97_vm4, %v100_v42, %v103_v0 }
  0x52   :  { %v105_v45 = vsel %vm95_vm5, nan, %v104_v44 }
  0x53   :  { %106 = vst [vmem:[%s359_s1] sm:$0xf] %v105_v45 }
  0x54   :  { %v243_v47 = vpop.eup %242 }
  0x55   :  { %v245_v48 = vpop.eup %244  ;;  %v208_v49 = vxor.u32 2147483648, %v243_v47 }
  0x56   :  { %v205_v50 = vxor.u32 2147483648, %v245_v48 }
  0x57   :  { %v209_v3 = vsel %vm207_vm6, %v208_v49, %v245_v48 }
  0x58   :  { %v206_v51 = vsel %vm204_vm7, %v243_v47, %v205_v50 }
  0x59   :  { %v210_v52 = vsel %vm203_vm8, %v206_v51, %v209_v3 }
  0x5a   :  { %v211_v53 = vsel %vm201_vm9, nan, %v210_v52 }
  0x5b   :  { %223 = vst [vmem:[%s359_s1 + $0x4] sm:$0xf] %v211_v53 }

// kernel: markov_decoder_forward.1
= control target key start
LH: loop header
LB: loop body
LE: loop exit
PB: predicated region body
PF: predicated region fallthrough
CT: control target
= control target key end

     0   :  { %v1126_v2 = vmov 0.0|0.0   ;;  %vm1127_vm0 = vmmov 0   ;;  %v1128_v4 = vmov 0.0   ;;  %s1315_s0 = inlined_call_operand.vmem [shape: f32[32,16], index: 0, kind: input, shape index: {}]   ;;  %s1316_s1 = inlined_call_operand.vmem [shape: f32[64,128], index: 1, kind: input, shape index: {}]   ;;  %s1317_s2 = inlined_call_operand.hbm [shape: f32[8,4], index: 2, kind: output, shape index: {}]  }
   0x1   :  { %v16_v0 = vld [vmem:[%s1316_s1] sm:$0xff]  ;;  %v17_v1 = vld [vmem:[%s1316_s1 + $0x8] sm:$0xff]  ;;  %1005 = vmatprep.subr.bf16.mxu0 %v1126_v2  ;;  %915 = vmatprep.mubr.msk.f32.mxu0 %vm1127_vm0, %v1128_v4  ;;  %v118_v6 = vld [vmem:[%s1316_s1 + $0x10] sm:$0xff] }
   0x2   :  { %v1006_v3 = vpack.c.bf16 %v17_v1, %v16_v0  ;;  %v1163_v5 = vpack.i.bf16 %v17_v1, %v16_v0  ;;  %v119_v7 = vld [vmem:[%s1316_s1 + $0x18] sm:$0xff]  ;;  %1008 = vmatprep.subr.bf16.mxu1 %v1126_v2  ;;  %932 = vmatprep.mubr.msk.f32.mxu1 %vm1127_vm0, %v1128_v4 }
   0x3   :  { %7 = vsyncpa [#allocation3], 0  ;;  %v1177_v8 = vld [vmem:[%s1315_s0] sm:$0xff]  ;;  %vm23_vm1 = vcmask 130048   ;;  %s1129_s19 = smov 64   ;;  %v1181_v9 = vpack.i.bf16 %v119_v7, %v118_v6  ;;  %v13_v10 = vld [vmem:[%s1315_s0 + $0x8] sm:$0xff]  ;;  %v1015_v22 = vpack.c.bf16 %v119_v7, %v118_v6 }
   0x4   :  { %1007 = vmatpush3.bf16.msra.mxu0 %v1006_v3  ;;  %1058 = vrot.lane.b32.xlu0 %v1163_v5, %s1129_s19  ;;  %v14_v11 = vld [vmem:[%s1315_s0 + $0x10] sm:$0xff]  ;;  %v852_v20 = vld [vmem:[%s1316_s1 + $0x38] ss:$0 sm:$0xff]  ;;  %s1130_s26 = smov 96   ;;  %vm150_vm2 = vcmask 261120   ;;  %v1220_v37 = vld [vmem:[%s1316_s1 + $0x20] sm:$0xff] }
   0x5   :  { %1014 = vmatprep.subr.bf16.mxu0 %v1126_v2  ;;  %v1225_v38 = vld [vmem:[%s1316_s1 + $0x28] sm:$0xff]  ;;  %v1131_v40 = vmov 15   ;;  %v1132_v41 = vmov 14   ;;  %v856_v42 = vld [vmem:[%s1316_s1 + $0x3a] ss:$0 sm:$0xff]  ;;  %v1247_v55 = vld [vmem:[%s1316_s1 + $0x30] sm:$0xff] }
   0x6   :  { %v1018_v39 = vpack.c.bf16 %v1225_v38, %v1220_v37  ;;  %1067 = vset.pattern.permute.xlu1 %v1131_v40  ;;  %1068 = vset.pattern.permute.xlu0 %v1131_v40  ;;  %v1254_v56 = vld [vmem:[%s1315_s0 + $0x18] sm:$0xff]  ;;  %vm389_vm3 = vcmask 64512   ;;  %s1133_s0 = smov 24   ;;  %s1134_s11 = smov 32   ;;  %vm466_vm4 = vcmask 195584   ;;  %vm836_vm5 = vcmask 31744  }
   0x7   :  { %916 = vmatmul.mubr.msk.f32.vlgmr.msra.gmra.mrb[0].mxu0 %vm23_vm1, %v1177_v8  ;;  %v860_v57 = vld [vmem:[%s1316_s1 + $0x39] ss:$0 sm:$0xff]  ;;  %s1135_s18 = smov 8   ;;  %s1137_s20 = smov 124  }
   0x8   :  { %918 = vmatprep.mubr.msk.f32.mxu0 %vm1127_vm0, %v1128_v4  ;;  %1063 = vrot.lane.b32.xlu0 %v1181_v9, %s1129_s19  ;;  %s1138_s21 = smov [#allocation2]  }
   0x9   :  { %1016 = vmatpush3.bf16.msra.mxu0 %v1015_v22 }
   0xa   :  { %1017 = vmatprep.subr.bf16.mxu0 %v1126_v2 }
   0xb   :  { %919 = vmatmul.mubr.msk.f32.gmra.mrb[2].mxu0 %vm23_vm1, %v13_v10 }
   0xc   :  { %921 = vmatprep.mubr.msk.f32.mxu0 %vm1127_vm0, %v1128_v4 }
   0xd   :  { %1019 = vmatpush3.bf16.msra.mxu0 %v1018_v39 }
   0xe   :  { %1023 = vmatprep.subr.bf16.mxu0 %v1126_v2 }
   0xf   :  { %922 = vmatmul.mubr.msk.f32.gmra.mrb[4].mxu0 %vm23_vm1, %v14_v11 }
  0x10   :  { %949 = vmatprep.mubr.msk.f32.mxu0 %vm1127_vm0, %v1128_v4 }
  0x76   :  { %v1059_v12 = vpop.permute.xlu0 %1058 }
  0x77   :  { %v1061_v13 = vunpack.i.h.bf16 %v1059_v12  ;;  %v1060_v14 = vunpack.i.l.bf16 %v1059_v12 }
  0x79   :  { %v1009_v15 = vpack.c.bf16 %v1061_v13, %v1060_v14 }
  0x7a   :  { %v1064_v16 = vpop.permute.xlu0 %1063 }
  0x7b   :  { %v1066_v17 = vunpack.i.h.bf16 %v1064_v16  ;;  %v1065_v18 = vunpack.i.l.bf16 %v1064_v16  ;;  %1010 = vmatpush3.bf16.msra.mxu1 %v1009_v15 }
  0x7c   :  { %1011 = vmatprep.subr.bf16.mxu1 %v1126_v2 }
  0x7d   :  { %v1012_v19 = vpack.c.bf16 %v1066_v17, %v1065_v18 }
  0x7f   :  { %1013 = vmatpush3.bf16.msra.mxu1 %v1012_v19 }
  0x80   :  { %958 = vmatprep.subr.mxu1 %v1128_v4 }
  0xda   :  { %v99_v21 = vpop.f32.mrb[0].mxu0 }
  0xdb   :  { %v100_v23 = vadd.f32 %v852_v20, %v99_v21  ;;  %v917_v24 = vpop.f32.mrb[1].mxu0 }
  0xdd   :  { %v113_v25 = vmax.f32 %v100_v23, 0.0 }
  0xde   :  { %v104_v26 = vpop.f32.mrb[2].mxu0 }
  0xdf   :  { %v105_v27 = vadd.f32 %v852_v20, %v104_v26  ;;  %128 = vrot.lane.b32.xlu1 %v113_v25, %s1130_s26  ;;  %v920_v28 = vpop.f32.mrb[3].mxu0 }
  0xe1   :  { %v114_v29 = vmax.f32 %v105_v27, 0.0 }
  0xe2   :  { %v109_v30 = vpop.f32.mrb[4].mxu0 }
  0xe3   :  { %v110_v31 = vadd.f32 %v852_v20, %v109_v30  ;;  %130 = vrot.lane.b32.xlu1 %v114_v29, %s1130_s26  ;;  %v923_v32 = vpop.f32.mrb[5].mxu0 }
  0xe5   :  { %v115_v33 = vmax.f32 %v110_v31, 0.0 }
  0xe7   :  { %132 = vrot.lane.b32.xlu0 %v115_v33, %s1130_s26  ;;  %354 = vperm.xlu1 %1067, %v1177_v8  }
  0xeb   :  { %358 = vperm.xlu0 %1068, %v13_v10   ;;  %362 = vperm.xlu1 %1067, %v14_v11  }
  0xef   :  { %1070 = vset.pattern.permute.xlu0 %v1132_v41  ;;  %1069 = vset.pattern.permute.xlu1 %v1132_v41 }
  0xf0   :  { %343 = vperm.xlu0 %1070, %v13_v10   ;;  %339 = vperm.xlu1 %1069, %v1177_v8  }
  0xf4   :  { %1101 = vset.pattern.permute.xlu0 %v1131_v40  ;;  %347 = vperm.xlu1 %1069, %v14_v11  }
 0x151   :  { %v129_v34 = vpop.permute.xlu1 %128 }
 0x152   :  { %933 = vmatmul.mubr.msk.f32.vlgmr.msra.gmra.mrb[0].mxu1 %vm150_vm2, %v129_v34  ;;  %v633_v34 = vld [vmem:[%s1316_s1 + $0x38] sm:$0xff] }
 0x153   :  { %935 = vmatprep.mubr.msk.f32.mxu1 %vm1127_vm0, %v1128_v4  ;;  %959 = vmatpush3.msra.mxu1 %v1247_v55 }
 0x154   :  { %1020 = vmatprep.subr.bf16.mxu1 %v1126_v2 }
 0x155   :  { %v131_v35 = vpop.permute.xlu1 %130 }
 0x156   :  { %936 = vmatmul.mubr.msk.f32.gmra.mrb[2].mxu1 %vm150_vm2, %v131_v35  ;;  %v1086_v35 = vpack.i.bf16 %v633_v34, %v1247_v55 }
 0x157   :  { %938 = vmatprep.mubr.msk.f32.mxu1 %vm1127_vm0, %v1128_v4 }
 0x159   :  { %v133_v36 = vpop.permute.xlu0 %132 }
 0x15a   :  { %939 = vmatmul.mubr.msk.f32.gmra.mrb[4].mxu1 %vm150_vm2, %v133_v36  ;;  %v866_v36 = vld [vmem:[%s1316_s1 + $0x3b] ss:$0 sm:$0xff] }
 0x15b   :  { %960 = vmatprep.mubr.msk.f32.mxu1 %vm1127_vm0, %v1128_v4 }
 0x15e   :  { %961 = vmatmul.mubr.msk.f32.vlgmr.msra.gmra.mrb[6].mxu1 %vm389_vm3, %v1254_v56 }
 0x15f   :  { %969 = vmatprep.mubr.msk.f32.mxu1 %vm1127_vm0, %v1128_v4 }
 0x166   :  { %v355_v61 = vpop.permute.xlu1 %354 }
 0x16a   :  { %v359_v3 = vpop.permute.xlu0 %358  ;;  %v363_v11 = vpop.permute.xlu1 %362 }
 0x16f   :  { %v340_v13 = vpop.permute.xlu1 %339  ;;  %v344_v15 = vpop.permute.xlu0 %343 }
 0x173   :  { %v348_v14 = vpop.permute.xlu1 %347 }
 0x225   :  { %v223_v43 = vpop.f32.mrb[0].mxu1 }
 0x226   :  { %v224_v44 = vadd.f32 %v856_v42, %v223_v43  ;;  %v934_v45 = vpop.f32.mrb[1].mxu1 }
 0x228   :  { %v237_v46 = vmul.f32 %v224_v44, %v113_v25 }
 0x229   :  { %v228_v47 = vpop.f32.mrb[2].mxu1 }
 0x22a   :  { %v229_v48 = vadd.f32 %v856_v42, %v228_v47  ;;  %v937_v49 = vpop.f32.mrb[3].mxu1  ;;  %950 = vmatmul.mubr.msk.f32.vlgmr.msra.gmra.mrb[6].mxu0 %vm150_vm2, %v237_v46 }
 0x22b   :  { %952 = vmatprep.mubr.msk.f32.mxu0 %vm1127_vm0, %v1128_v4 }
 0x22c   :  { %v238_v50 = vmul.f32 %v229_v48, %v114_v29 }
 0x22d   :  { %v233_v51 = vpop.f32.mrb[4].mxu1 }
 0x22e   :  { %v234_v52 = vadd.f32 %v856_v42, %v233_v51  ;;  %953 = vmatmul.mubr.msk.f32.gmra.mrb[8].mxu0 %vm150_vm2, %v238_v50  ;;  %v940_v53 = vpop.f32.mrb[5].mxu1 }
 0x22f   :  { %955 = vmatprep.mubr.msk.f32.mxu0 %vm1127_vm0, %v1128_v4 }
 0x230   :  { %v239_v54 = vmul.f32 %v234_v52, %v115_v33  ;;  %v1081_v33 = vpack.i.bf16 %v1225_v38, %v1220_v37 }
 0x232   :  { %956 = vmatmul.mubr.msk.f32.gmra.mrb[10].mxu0 %vm150_vm2, %v239_v54 }
 0x233   :  { %980 = vmatprep.mubr.msk.f32.mxu0 %vm1127_vm0, %v1128_v4 }
 0x2fd   :  { %v324_v58 = vpop.f32.mrb[6].mxu0 }
 0x2fe   :  { %v325_v59 = vadd.f32 %v860_v57, %v324_v58  ;;  %v951_v60 = vpop.f32.mrb[7].mxu0 }
 0x300   :  { %v365_v62 = vmul.f32 %v355_v61, %v325_v59  ;;  %v350_v17 = vmul.f32 %v340_v13, %v325_v59 }
 0x301   :  { %v329_v63 = vpop.f32.mrb[8].mxu0 }
 0x302   :  { %v330_v0 = vadd.f32 %v860_v57, %v329_v63  ;;  %371 = vrot.lane.b32.xlu1 %v365_v62, %s1130_s26  ;;  %v954_v1 = vpop.f32.mrb[9].mxu0 }
 0x304   :  { %v366_v6 = vmul.f32 %v359_v3, %v330_v0  ;;  %v351_v18 = vmul.f32 %v344_v15, %v330_v0  ;;  %v869_v3 = vld [vmem:[%s1316_s1 + $0x3c] ss:$0 sm:$0xff]  ;;  %s844_s1 = sshll.u32 %s1138_s21, 4  ;;  %s845_s1 = int_to_ptr.vmem [resolvable:$true] %s844_s1 }
 0x305   :  { %v334_v7 = vpop.f32.mrb[10].mxu0  ;;  %s1102_s22 = scalar_lea.vmem %s845_s1, 128  ;;  %p1107_p1 = scmp.lt.s32.totalorder %s845_s1, %s845_s1 }
 0x306   :  { %v335_v8 = vadd.f32 %v860_v57, %v334_v7  ;;  %373 = vrot.lane.b32.xlu0 %v366_v6, %s1130_s26  ;;  %v957_v10 = vpop.f32.mrb[11].mxu0  ;;  %p1103_p0 = scmp.ne.s32.totalorder %s845_s1, %s1102_s22  ;;  %p1108_p2 = scmp.lt.s32.totalorder %s1102_s22, %s1102_s22 }
 0x308   :  { %v367_v12 = vmul.f32 %v363_v11, %v335_v8  ;;  %v352_v25 = vmul.f32 %v348_v14, %v335_v8  ;;  %p1109_p3 = por %p1108_p2, %p1107_p1 }
 0x30a   :  { %375 = vrot.lane.b32.xlu1 %v367_v12, %s1130_s26  ;;  %464 = vrot.lane.b32.xlu0 %v1220_v37, %s1133_s0  ;;  %p1110_p4 = pnand %p1109_p3, %p1103_p0 }
 0x30e   :  { %1072 = vrot.lane.b32.xlu1 %v1163_v5, %s1134_s11  ;;  %1077 = vrot.lane.b32.xlu0 %v1181_v9, %s1134_s11 }
 0x312   :  { %386 = vrot.lane.b32.xlu1 %v856_v42, %s1130_s26  ;;  %1082 = vrot.lane.b32.xlu0 %v1081_v33, %s1129_s19 }
 0x316   :  { %1087 = vrot.lane.b32.xlu1 %v1086_v35, %s1129_s19  ;;  %1092 = vrot.lane.b32.xlu0 %v1081_v33, %s1134_s11  ;;  %s1136_s19 = smov 120  }
 0x31a   :  { %1097 = vrot.lane.b32.xlu1 %v1086_v35, %s1134_s11  ;;  %651 = vrot.lane.b32.xlu0 %v866_v36, %s1130_s26 }
 0x374   :  { %v372_v16 = vpop.permute.xlu1 %371 }
 0x375   :  { %v380_v20 = vadd.f32 %v372_v16, %v350_v17 }
 0x378   :  { %v374_v19 = vpop.permute.xlu0 %373 }
 0x379   :  { %v381_v21 = vadd.f32 %v374_v19, %v351_v18 }
 0x37b   :  { %v1021_v22 = vpack.c.bf16 %v381_v21, %v380_v20 }
 0x37c   :  { %v376_v23 = vpop.permute.xlu1 %375  ;;  %v465_v24 = vpop.permute.xlu0 %464 }
 0x37d   :  { %1022 = vmatpush3.bf16.msra.mxu1 %v1021_v22  ;;  %v382_v5 = vadd.f32 %v376_v23, %v352_v25 }
 0x37e   :  { %967 = vmatprep.subr.mxu1 %v1128_v4 }
 0x380   :  { %v1073_v9 = vpop.permute.xlu1 %1072  ;;  %v1078_v26 = vpop.permute.xlu0 %1077 }
 0x381   :  { %968 = vmatpush3.msra.mxu1 %v382_v5  ;;  %v1075_v27 = vunpack.i.h.bf16 %v1073_v9  ;;  %v1074_v28 = vunpack.i.l.bf16 %v1073_v9  ;;  %v1080_v29 = vunpack.i.h.bf16 %v1078_v26  ;;  %v1079_v30 = vunpack.i.l.bf16 %v1078_v26 }
 0x382   :  { %970 = vmatmul.mubr.msk.f32.vlgmr.msra.gmra.mrb[6].mxu1 %vm466_vm4, %v465_v24  ;;  %1029 = vmatprep.subr.bf16.mxu1 %v1126_v2 }
 0x383   :  { %v1024_v31 = vpack.c.bf16 %v1075_v27, %v1074_v28  ;;  %991 = vmatprep.mubr.msk.f32.mxu1 %vm1127_vm0, %v1128_v4  ;;  %v1027_v32 = vpack.c.bf16 %v1080_v29, %v1079_v30 }
 0x384   :  { %v387_v37 = vpop.permute.xlu1 %386  ;;  %v1083_v38 = vpop.permute.xlu0 %1082 }
 0x385   :  { %1025 = vmatpush3.bf16.msra.mxu0 %v1024_v31  ;;  %v1085_v39 = vunpack.i.h.bf16 %v1083_v38  ;;  %v1084_v40 = vunpack.i.l.bf16 %v1083_v38 }
 0x386   :  { %1026 = vmatprep.subr.bf16.mxu0 %v1126_v2 }
 0x387   :  { %v1030_v44 = vpack.c.bf16 %v1085_v39, %v1084_v40 }
 0x388   :  { %v1088_v41 = vpop.permute.xlu1 %1087  ;;  %v1093_v49 = vpop.permute.xlu0 %1092 }
 0x389   :  { %1028 = vmatpush3.bf16.msra.mxu0 %v1027_v32  ;;  %v1090_v42 = vunpack.i.h.bf16 %v1088_v41  ;;  %v1089_v43 = vunpack.i.l.bf16 %v1088_v41  ;;  %1031 = vmatpush3.bf16.msra.mxu1 %v1030_v44  ;;  %v1095_v51 = vunpack.i.h.bf16 %v1093_v49  ;;  %v1094_v52 = vunpack.i.l.bf16 %v1093_v49 }
 0x38a   :  { %1035 = vmatprep.subr.bf16.mxu0 %v1126_v2  ;;  %1032 = vmatprep.subr.bf16.mxu1 %v1126_v2 }
 0x38b   :  { %v1033_v45 = vpack.c.bf16 %v1090_v42, %v1089_v43  ;;  %v1036_v55 = vpack.c.bf16 %v1095_v51, %v1094_v52 }
 0x38c   :  { %v1098_v50 = vpop.permute.xlu1 %1097  ;;  %v652_v62 = vpop.permute.xlu0 %651 }
 0x38d   :  { %1034 = vmatpush3.bf16.msra.mxu1 %v1033_v45  ;;  %v1100_v53 = vunpack.i.h.bf16 %v1098_v50  ;;  %v1099_v54 = vunpack.i.l.bf16 %v1098_v50 }
 0x38f   :  { %v1039_v57 = vpack.c.bf16 %v1100_v53, %v1099_v54 }
 0x455   :  { %v535_v46 = vpop.f32.mrb[6].mxu1 }
 0x456   :  { %v1041_v47 = vadd.f32 %v535_v46, %v387_v37  ;;  %v971_v48 = vpop.f32.mrb[7].mxu1 }
 0x458   :  { %981 = vmatmul.mubr.msk.f32.vlgmr.msra.gmra.mrb[12].mxu0 %vm150_vm2, %v1041_v47 }
 0x459   :  { %1002 = vmatprep.mubr.msk.f32.mxu0 %vm1127_vm0, %v1128_v4  ;;  %1037 = vmatpush3.bf16.msra.mxu0 %v1036_v55 }
 0x45a   :  { %1038 = vmatprep.subr.bf16.mxu0 %v1126_v2 }
 0x45d   :  { %1040 = vmatpush3.bf16.msra.mxu0 %v1039_v57 }
 0x52b   :  { %v625_v58 = vpop.f32.mrb[12].mxu0 }
 0x52c   :  { %v626_v59 = vadd.f32 %v866_v36, %v625_v58  ;;  %v982_v60 = vpop.f32.mrb[13].mxu0 }
 0x52e   :  { %v629_v61 = vmax.f32 %v626_v59, 0.0 }
 0x530   :  { %992 = vmatmul.mubr.msk.f32.vlgmr.msra.gmra.mrb[8].mxu1 %vm150_vm2, %v629_v61 }
 0x603   :  { %v723_v4 = vpop.f32.mrb[8].mxu1 }
 0x604   :  { %v724_v63 = vadd.f32 %v723_v4, %v652_v62  ;;  %v993_v0 = vpop.f32.mrb[9].mxu1 }
 0x606   :  { %v727_v1 = vmax.f32 %v724_v63, 0.0 }
 0x608   :  { %1003 = vmatmul.mubr.msk.f32.vlgmr.msra.gmra.mrb[14].mxu0 %vm150_vm2, %v727_v1 }
 0x6db   :  { %v814_v6 = vpop.f32.mrb[14].mxu0 }
 0x6dc   :  { %v815_v2 = vadd.f32 %v869_v3, %v814_v6  ;;  %v1004_v7 = vpop.f32.mrb[15].mxu0 }
 0x6de   :  { %819 = vrot.lane.b32.xlu1 %v815_v2, %s1135_s18 }
 0x750   :  { %v820_v8 = vpop.permute.xlu1 %819 }
 0x751   :  { %v822_v10 = vmul.f32 %v820_v8, %v1254_v56 }
 0x753   :  { %828 = vrot.lane.b32.xlu1 %v822_v10, %s1136_s19  ;;  %824 = vrot.lane.b32.xlu0 %v822_v10, %s1137_s20 }
 0x7c5   :  { %v825_v11 = vpop.permute.xlu0 %824  ;;  %v829_v13 = vpop.permute.xlu1 %828 }
 0x7c6   :  { %v827_v12 = vadd.f32 %v825_v11, %v1254_v56 }
 0x7c8   :  { %v831_v14 = vadd.f32 %v829_v13, %v827_v12 }
 0x7ca   :  { %833 = vrot.lane.b32.xlu0 %v831_v14, %s1137_s20 }
 0x83c   :  { %v834_v15 = vpop.permute.xlu0 %833 }
 0x83d   :  { %837 = vst.msk [vmem:[#allocation2] sm:$0xff] %vm836_vm5, %v834_v15 }
 0x83e   :  { %1113 = shalt.err (!%p1110_p4)
}
 0x83f   :  { %s1114_s25 = scalar_lea.hbm %s1317_s2, 128 }
 0x840   :  { %p1115_p5 = scmp.ne.s32.totalorder %s1317_s2, %s1114_s25  ;;  %p1118_p6 = scmp.lt.u32.totalorder %s1114_s25, %s1317_s2 }
 0x842   :  { %p1120_p7 = pnand %p1118_p6, %p1115_p5 }
 0x844   :  { %1123 = shalt.err (!%p1120_p7)
}
 0x845   :  { %847 = dma.vmem_to_hbm [thread:$0]  %s845_s1, 128, %s1317_s2, [#allocation3]  }
 0x846   :  { %1124 = dma.done.wait [#allocation3], 128  }
 0x847   :  { %1125 = vsyncadd [#allocation3], 4294967168 }
 0x848   :  { %851 = vsyncpa [#allocation3], 1 }

</bundles_post_ra>
